<compile_context>
chip_gen: v7x
topology: tpu7x:2x2x1
jax: 0.10.0
libtpu: 0.0.40
codegen_flags: <defaults>
</compile_context>

<pallas_src>
import functools

import jax
import jax.numpy as jnp
from jax.experimental import pallas as pl
from jax.experimental.pallas import tpu as pltpu

_LOG_2PI = 1.8378770664093453  # log(2*pi)


def _round_up(x, m):
    return ((x + m - 1) // m) * m


def _gaussian_prior_logprob_kernel(z_ref, mean_ref, inv_std_ref, const_ref, out_ref):
    # z block: (TB, M); params broadcast as (1, M); const is (1, 1).
    z = z_ref[...].astype(jnp.float32)                    # in-kernel upcast (hidden under DMA)
    t = (z - mean_ref[...]) * inv_std_ref[...]            # (TB, M)  VPU
    ssq = jnp.sum(t * t, axis=-1, keepdims=True)          # (TB, 1)  XLU row reduce
    out_ref[...] = -0.5 * ssq + const_ref[0, 0]           # per-row scale + const


def gaussian_prior_log_prob(z, mean, std, *, block_rows=None,
                            vmem_tile_budget_bytes=8 * 1024 * 1024):
    """log_prob of z under Independent(Normal(mean, std), 1).

    z: (B, M) float (f32 or bf16), mean/std: (M,) float. Returns (B,) float32.
    """
    B, M = z.shape

    # ---- parameter-only preprocessing (O(M), once, outside the hot loop) ----
    mean2d = mean.reshape(1, M).astype(jnp.float32)
    std_f32 = std.astype(jnp.float32)
    inv_std2d = (1.0 / std_f32).reshape(1, M)
    const = -(jnp.sum(jnp.log(std_f32)) + 0.5 * M * _LOG_2PI)
    const2d = const.reshape(1, 1).astype(jnp.float32)

    # ---- batch tile size: largest multiple of 8 fitting the per-buffer budget ----
    if block_rows is None:
        bytes_per_row = M * jnp.dtype(z.dtype).itemsize
        tb = max(8, vmem_tile_budget_bytes // max(1, bytes_per_row))
        tb = (tb // 8) * 8
        tb = min(tb, _round_up(B, 8))
    else:
        tb = block_rows
    grid = (pl.cdiv(B, tb),)

    out = pl.pallas_call(
        _gaussian_prior_logprob_kernel,
        out_shape=jax.ShapeDtypeStruct((B, 1), jnp.float32),
        grid=grid,
        in_specs=[
            pl.BlockSpec((tb, M), lambda i: (i, 0)),   # z: tiled over batch
            pl.BlockSpec((1, M), lambda i: (0, 0)),    # mean: resident across grid
            pl.BlockSpec((1, M), lambda i: (0, 0)),    # inv_std: resident across grid
            pl.BlockSpec((1, 1), lambda i: (0, 0)),    # const: resident across grid
        ],
        out_specs=pl.BlockSpec((tb, 1), lambda i: (i, 0)),
        compiler_params=pltpu.CompilerParams(
            dimension_semantics=("parallel",),          # megacore-shard the batch axis
            vmem_limit_bytes=32 * 1024 * 1024,
        ),
    )(z, mean2d, inv_std2d, const2d)
    return out[:, 0]


class GaussianPriorPallas:
    """JAX/Pallas port of the PyTorch GaussianPrior module."""

    def __init__(self, M):
        self.M = M
        # Deterministic parameter init, matching torch.zeros / torch.ones.
        self.mean = jnp.zeros((M,), dtype=jnp.float32)
        self.std = jnp.ones((M,), dtype=jnp.float32)

    def log_prob(self, z, **kwargs):
        return gaussian_prior_log_prob(z, self.mean, self.std, **kwargs)

    def sample(self, key, sample_shape=()):
        # TODO(synk): sampling / returning a Distribution object has no Pallas
        # equivalent; sampling is plain-JAX glue (mean + std * eps).
        shape = tuple(sample_shape) + (self.M,)
        eps = jax.random.normal(key, shape, dtype=jnp.float32)
        return self.mean + self.std * eps


def _reference_log_prob(z, mean, std):
    zf = z.astype(jnp.float32)
    t = (zf - mean) / std
    return jnp.sum(-0.5 * t * t - jnp.log(std) - 0.5 * _LOG_2PI, axis=-1)


if __name__ == "__main__":
    key = jax.random.PRNGKey(0)

    # Small shapes matching the module: batch=8, latent dim M=32.
    B, M = 8, 32
    prior = GaussianPriorPallas(M)
    z = jax.random.normal(key, (B, M), dtype=jnp.float32)

    logp = prior.log_prob(z)
    logp = jax.block_until_ready(logp)

    ref = _reference_log_prob(z, prior.mean, prior.std)
    assert logp.shape == (B,)
    assert jnp.allclose(logp, ref, atol=1e-5, rtol=1e-5)

    # Second (still small) case exercising the multi-tile grid + parallel axis.
    B2, M2 = 64, 128
    prior2 = GaussianPriorPallas(M2)
    z2 = jax.random.normal(jax.random.PRNGKey(1), (B2, M2), dtype=jnp.float32)
    logp2 = jax.block_until_ready(prior2.log_prob(z2, block_rows=16))  # grid=(4,)
    ref2 = _reference_log_prob(z2, prior2.mean, prior2.std)
    assert logp2.shape == (B2,)
    assert jnp.allclose(logp2, ref2, atol=1e-4, rtol=1e-5)

    print("KERNEL_OK")
</pallas_src>

<mosaic_0001>
module attributes {stable_mosaic.version = 11 : i64} {
  func.func @_gaussian_prior_logprob_kernel(%arg0: i32, %arg1: memref<8x32xf32, #tpu.memory_space<vmem>>, %arg2: memref<1x32xf32, #tpu.memory_space<vmem>>, %arg3: memref<1x32xf32, #tpu.memory_space<vmem>>, %arg4: memref<1x1xf32, #tpu.memory_space<vmem>>, %arg5: memref<8x1xf32, #tpu.memory_space<vmem>>) attributes {dimension_semantics = [#tpu.dimension_semantics<parallel>], iteration_bounds = array<i64: 1>, scalar_prefetch = 0 : i64, scratch_operands = 0 : i64, tpu.core_type = #tpu.core_type<tc>, window_params = [{transform_indices = @transform_0, window_bounds = array<i64: 8, 32>}, {pipeline_mode = #tpu.pipeline_mode<synchronous>, transform_indices = @transform_1, window_bounds = array<i64: 1, 32>}, {pipeline_mode = #tpu.pipeline_mode<synchronous>, transform_indices = @transform_2, window_bounds = array<i64: 1, 32>}, {pipeline_mode = #tpu.pipeline_mode<synchronous>, transform_indices = @transform_3, window_bounds = array<i64: 1, 1>}, {transform_indices = @transform_4, window_bounds = array<i64: 8, 1>}]} {
    %c0 = arith.constant 0 : index
    %c0_0 = arith.constant 0 : index
    %0 = vector.load %arg1[%c0, %c0_0] : memref<8x32xf32, #tpu.memory_space<vmem>>, vector<8x32xf32>
    %c0_1 = arith.constant 0 : index
    %c0_2 = arith.constant 0 : index
    %1 = vector.load %arg2[%c0_1, %c0_2] : memref<1x32xf32, #tpu.memory_space<vmem>>, vector<1x32xf32>
    %2 = vector.broadcast %1 : vector<1x32xf32> to vector<8x32xf32>
    %3 = arith.subf %0, %2 : vector<8x32xf32>
    %c0_3 = arith.constant 0 : index
    %c0_4 = arith.constant 0 : index
    %4 = vector.load %arg3[%c0_3, %c0_4] : memref<1x32xf32, #tpu.memory_space<vmem>>, vector<1x32xf32>
    %5 = vector.broadcast %4 : vector<1x32xf32> to vector<8x32xf32>
    %6 = arith.mulf %3, %5 : vector<8x32xf32>
    %7 = arith.mulf %6, %6 : vector<8x32xf32>
    %cst = arith.constant dense<0.000000e+00> : vector<8xf32>
    %8 = vector.multi_reduction <add>, %7, %cst [1] : vector<8x32xf32> to vector<8xf32>
    %9 = vector.shape_cast %8 : vector<8xf32> to vector<8x1xf32>
    %cst_5 = arith.constant -5.000000e-01 : f32
    %10 = vector.broadcast %cst_5 : f32 to vector<8x1xf32>
    %11 = arith.mulf %10, %9 : vector<8x1xf32>
    %c0_6 = arith.constant 0 : index
    %c0_7 = arith.constant 0 : index
    %12 = vector.load %arg4[%c0_6, %c0_7] : memref<1x1xf32, #tpu.memory_space<vmem>>, vector<1x1xf32>
    %13 = vector.extract %12[0, 0] : f32 from vector<1x1xf32>
    %14 = vector.broadcast %13 : f32 to vector<8x1xf32>
    %15 = arith.addf %11, %14 : vector<8x1xf32>
    %c0_8 = arith.constant 0 : index
    %c0_9 = arith.constant 0 : index
    %16 = vector.load %arg5[%c0_8, %c0_9] : memref<8x1xf32, #tpu.memory_space<vmem>>, vector<8x1xf32>
    tpu.vector_store %arg5[%c0_8, %c0_9], %15 {strides = array<i32>} : memref<8x1xf32, #tpu.memory_space<vmem>>, vector<8x1xf32>,
    return
  }
  func.func @transform_0(%arg0: i32) -> (i32, i32) {
    %c0_i32 = arith.constant 0 : i32
    %c0_i32_0 = arith.constant 0 : i32
    return %arg0, %c0_i32 : i32, i32
  }
  func.func @transform_1(%arg0: i32) -> (i32, i32) {
    %c0_i32 = arith.constant 0 : i32
    %c0_i32_0 = arith.constant 0 : i32
    %c0_i32_1 = arith.constant 0 : i32
    return %c0_i32, %c0_i32_0 : i32, i32
  }
  func.func @transform_2(%arg0: i32) -> (i32, i32) {
    %c0_i32 = arith.constant 0 : i32
    %c0_i32_0 = arith.constant 0 : i32
    %c0_i32_1 = arith.constant 0 : i32
    return %c0_i32, %c0_i32_0 : i32, i32
  }
  func.func @transform_3(%arg0: i32) -> (i32, i32) {
    %c0_i32 = arith.constant 0 : i32
    %c0_i32_0 = arith.constant 0 : i32
    %c0_i32_1 = arith.constant 0 : i32
    return %c0_i32, %c0_i32_0 : i32, i32
  }
  func.func @transform_4(%arg0: i32) -> (i32, i32) {
    %c0_i32 = arith.constant 0 : i32
    %c0_i32_0 = arith.constant 0 : i32
    return %arg0, %c0_i32 : i32, i32
  }
}

</mosaic_0001>

<bundles_post_ra>
// kernel: tpu_custom_call.1
= control target key start
LH: loop header
LB: loop body
LE: loop exit
PB: predicated region body
PF: predicated region fallthrough
CT: control target
= control target key end

     0   :  { %s144_s0 = inlined_call_operand.hbm [shape: f32[8,32], index: 0, kind: input, shape index: {}]   ;;  %s145_s1 = inlined_call_operand.vmem [shape: f32[1,32], index: 1, kind: input, shape index: {}]   ;;  %s146_s2 = inlined_call_operand.vmem [shape: f32[1,32], index: 2, kind: input, shape index: {}]   ;;  %s147_s3 = inlined_call_operand.<no memory space> [shape: f32[1,1], index: 3, kind: input, shape index: {}]   ;;  %s148_s4 = inlined_call_operand.vmem [shape: f32[8,1], index: 4, kind: output, shape index: {}]  }
   0x1   :  { %v9_v0 = vstv %s147_s3 }
   0x2   :  { %10 = vst [vmem:[#allocation2] sm:$0x1] %v9_v0 }
   0x3   :  { %11 = vsyncpa [#allocation4], 0  ;;  %s94_s17 = smov [#allocation3]   ;;  %s70_s21 = scalar_lea.hbm %s144_s0, 128 }
   0x4   :  { %s18_s18 = sshll.u32 %s94_s17, 4  ;;  %p71_p0 = scmp.ne.s32.totalorder %s144_s0, %s70_s21  ;;  %s19_s18 = int_to_ptr.vmem [resolvable:$true] %s18_s18 }
   0x5   :  { %p74_p1 = scmp.lt.u32.totalorder %s70_s21, %s144_s0 }
   0x7   :  { %p76_p2 = pnand %p74_p1, %p71_p0 }
   0x9   :  { %79 = shalt.err (!%p76_p2)
}
   0xa   :  { %s80_s3 = scalar_lea.vmem %s19_s18, 128  ;;  %p85_p4 = scmp.lt.s32.totalorder %s19_s18, %s19_s18 }
   0xb   :  { %p81_p3 = scmp.ne.s32.totalorder %s19_s18, %s80_s3  ;;  %p86_p5 = scmp.lt.s32.totalorder %s80_s3, %s80_s3 }
   0xd   :  { %p87_p6 = por %p86_p5, %p85_p4 }
   0xf   :  { %p88_p7 = pnand %p87_p6, %p81_p3 }
  0x11   :  { %91 = shalt.err (!%p88_p7)
}
  0x12   :  { %21 = dma.hbm_to_vmem [thread:$0]  %s144_s0, 128, %s19_s18, [#allocation4]  }
  0x13   :  { %92 = dma.done.wait [#allocation4], 128  }
  0x14   :  { %93 = vsyncadd [#allocation4], 4294967168  ;;  %v31_v1 = vld [vmem:[#allocation3] sm:$0xff]  ;;  %v65_v2 = vld [vmem:[%s145_s1] ss:$0 sm:$0xff]  ;;  %vm49_vm0 = vcmask 261120  }
  0x15   :  { %v66_v3 = vld [vmem:[%s146_s2] ss:$0 sm:$0xff]  ;;  %v39_v4 = vsub.f32 %v31_v1, %v65_v2  ;;  %vm58_vm1 = vcmask 7168  }
  0x16   :  { %v54_v5 = vld [vmem:[#allocation2] sm:$0x1] }
  0x17   :  { %67 = vpush %v54_v5  ;;  %v47_v6 = vmul.f32 %v66_v3, %v39_v4 }
  0x19   :  { %v48_v7 = vmul.f32 %v47_v6, %v47_v6 }
  0x1b   :  { %v50_v8 = vsel %vm49_vm0, %v48_v7, 0.0 }
  0x1c   :  { %51 = vadd.xlane.f32.xlu0 %v50_v8 }
  0x48   :  { %s68_s0 = spop %67 }
  0x49   :  { %v56_v10 = vstv %s68_s0 }
  0xa9   :  { %v52_v9 = vpop.xlane.xlu0 %51 }
  0xaa   :  { %v53_v11 = vmul.f32 -0.5, %v52_v9 }
  0xac   :  { %v57_v12 = vadd.f32 %v56_v10, %v53_v11 }
  0xae   :  { %59 = vst.msk [vmem:[%s148_s4] sm:$0xff] %vm58_vm1, %v57_v12 }
  0xaf   :  { %64 = vsyncpa [#allocation4], 1 }

</bundles_post_ra>
